<compile_context>
chip_gen: v5e
topology: v5e:2x2
jax: 0.10.0
libtpu: 0.0.40
codegen_flags: <defaults>
</compile_context>

<pallas_src>
import functools

import jax
import jax.numpy as jnp
from jax.experimental import pallas as pl
from jax.experimental.pallas import tpu as pltpu


def _round_up(x, m):
    return (x + m - 1) // m * m


def _matmul_bias_kernel(p_ref, w_ref, b_ref, o_ref):
    # p_ref: (tm, K) bf16   w_ref: (K, E) bf16
    # b_ref: (1, E)  f32    o_ref: (tm, E) x.dtype
    acc = jnp.dot(p_ref[...], w_ref[...], preferred_element_type=jnp.float32)
    o_ref[...] = (acc + b_ref[...]).astype(o_ref.dtype)


def _pallas_matmul_bias(patches, w2d, b2d, *, tm, out_dtype):
    M, K = patches.shape
    _, E = w2d.shape
    # 1-D grid over M only: weight/bias block index is constant, so the tile
    # stays resident in VMEM; patches and output are streamed exactly once.
    grid = (pl.cdiv(M, tm),)
    return pl.pallas_call(
        _matmul_bias_kernel,
        out_shape=jax.ShapeDtypeStruct((M, E), out_dtype),
        grid_spec=pltpu.PrefetchScalarGridSpec(
            num_scalar_prefetch=0,
            grid=grid,
            in_specs=[
                pl.BlockSpec((tm, K), lambda i: (i, 0)),   # K = full dim
                pl.BlockSpec((K, E), lambda i: (0, 0)),    # resident weight
                pl.BlockSpec((1, E), lambda i: (0, 0)),    # resident bias
            ],
            out_specs=pl.BlockSpec((tm, E), lambda i: (i, 0)),  # E = full dim
        ),
        compiler_params=pltpu.CompilerParams(
            dimension_semantics=("parallel",),
            vmem_limit_bytes=40 * 1024 * 1024),
    )(patches, w2d, b2d)


@functools.partial(jax.jit, static_argnames=("stride", "padding"))
def hiera_patch_embed(x, weight, bias, *, stride=(4, 4), padding=(3, 3)):
    """x: (B, C, H, W). weight: (E, C, kh, kw). bias: (E,).
    Returns (B, Ho, Wo, E) in x.dtype."""
    B, C, H, W = x.shape
    E, _, kh, kw = weight.shape
    sh, sw = stride
    ph, pw = padding
    Ho = (H + 2 * ph - kh) // sh + 1
    Wo = (W + 2 * pw - kw) // sw + 1

    # ---- im2col glue: one patches materialization, bf16, no K padding ----
    xb = x.astype(jnp.bfloat16)
    xp = jnp.pad(xb, ((0, 0), (0, 0), (ph, ph), (pw, pw)))
    xp = jnp.transpose(xp, (0, 2, 3, 1))               # (B, Hp, Wp, C)  NHWC
    cols = []
    for ki in range(kh):
        for kj in range(kw):
            cols.append(xp[:, ki:ki + sh * (Ho - 1) + 1:sh,
                              kj:kj + sw * (Wo - 1) + 1:sw, :])
    # Concatenate directly in the final K order (ki, kj, c); the (M, K)
    # reshape is contiguous (free).
    p = jnp.concatenate(cols, axis=-1).reshape(B * Ho * Wo, C * kh * kw)

    # weight (E, C, kh, kw) -> (kh, kw, C, E) -> (K, E); matches p's K order.
    w2d = jnp.transpose(weight, (2, 3, 1, 0)).reshape(C * kh * kw, E)
    w2d = w2d.astype(jnp.bfloat16)
    b2d = bias.reshape(1, E).astype(jnp.float32)

    M, K = p.shape

    # M tile: large to amortize the ~0.35 us per-grid-step overhead; multiple
    # of 16 (bf16 sublane packing) and of 256 when big (serves both the
    # 128x128 v5e MXU and the 256x256 v6e/v7x MXU). Partial last block is
    # handled by Pallas boundary clipping (OOB stores masked).
    tm = min(2048, _round_up(M, 16))
    out_bytes = jnp.dtype(x.dtype).itemsize

    def _working_set(t):
        # double-buffered patches + output tiles, plus resident weight/bias
        return 2 * (t * K * 2 + t * E * out_bytes) + K * E * 2 + E * 4

    # Keep the pipelined working set comfortably under v7x's 32 MiB scoped
    # default (64 MiB physical); v5e/v6e have far more headroom.
    while tm > 256 and _working_set(tm) > 24 * 1024 * 1024:
        tm //= 2

    # ---- hot path: matmul + bias on the MXU ----
    out = _pallas_matmul_bias(p, w2d, b2d, tm=tm, out_dtype=x.dtype)
    return out.reshape(B, Ho, Wo, E)


if __name__ == "__main__":
    key = jax.random.PRNGKey(0)
    k_x, k_w, k_b = jax.random.split(key, 3)

    # Small shapes consistent with the module: in_chans=3 (module default),
    # embed_dim=32 (small stand-in for 768), kernel 7x7, stride 4, pad 3.
    B, C, H, W = 2, 3, 16, 16
    E, kh, kw = 32, 7, 7
    stride, padding = (4, 4), (3, 3)

    x = jax.random.normal(k_x, (B, C, H, W), dtype=jnp.float32)
    weight = jax.random.normal(k_w, (E, C, kh, kw), dtype=jnp.float32) * 0.05
    bias = jax.random.normal(k_b, (E,), dtype=jnp.float32) * 0.05

    out = hiera_patch_embed(x, weight, bias, stride=stride, padding=padding)
    out = jax.block_until_ready(out)

    # Reference: XLA conv (same semantics as nn.Conv2d), evaluated on
    # bf16-rounded operands since the kernel feeds the MXU in bf16 with f32
    # accumulation (products of bf16 values are exact in f32; only the
    # accumulation order differs).
    xr = x.astype(jnp.bfloat16).astype(jnp.float32)
    wr = weight.astype(jnp.bfloat16).astype(jnp.float32)
    ref = jax.lax.conv_general_dilated(
        xr, wr, window_strides=stride, padding=(padding, padding),
        dimension_numbers=("NCHW", "OIHW", "NCHW"),
    ) + bias.reshape(1, E, 1, 1)
    ref = jnp.transpose(ref, (0, 2, 3, 1))

    Ho = (H + 2 * padding[0] - kh) // stride[0] + 1
    Wo = (W + 2 * padding[1] - kw) // stride[1] + 1
    assert out.shape == (B, Ho, Wo, E), out.shape
    assert jnp.allclose(out, ref, atol=2e-3, rtol=2e-3), float(
        jnp.max(jnp.abs(out - ref)))

    print("KERNEL_OK")
</pallas_src>

<mosaic_0001>
module attributes {stable_mosaic.version = 11 : i64} {
  func.func @_matmul_bias_kernel(%arg0: i32, %arg1: memref<32x147xbf16, #tpu.memory_space<vmem>>, %arg2: memref<147x32xbf16, #tpu.memory_space<vmem>>, %arg3: memref<1x32xf32, #tpu.memory_space<vmem>>, %arg4: memref<32x32xf32, #tpu.memory_space<vmem>>) attributes {dimension_semantics = [#tpu.dimension_semantics<parallel>], iteration_bounds = array<i64: 1>, scalar_prefetch = 0 : i64, scratch_operands = 0 : i64, tpu.core_type = #tpu.core_type<tc>, window_params = [{transform_indices = @transform_0, window_bounds = array<i64: 32, 147>}, {pipeline_mode = #tpu.pipeline_mode<synchronous>, transform_indices = @transform_1, window_bounds = array<i64: 147, 32>}, {pipeline_mode = #tpu.pipeline_mode<synchronous>, transform_indices = @transform_2, window_bounds = array<i64: 1, 32>}, {transform_indices = @transform_3, window_bounds = array<i64: 32, 32>}]} {
    %c0 = arith.constant 0 : index
    %c0_0 = arith.constant 0 : index
    %0 = vector.load %arg1[%c0, %c0_0] : memref<32x147xbf16, #tpu.memory_space<vmem>>, vector<32x147xbf16>
    %c0_1 = arith.constant 0 : index
    %c0_2 = arith.constant 0 : index
    %1 = vector.load %arg2[%c0_1, %c0_2] : memref<147x32xbf16, #tpu.memory_space<vmem>>, vector<147x32xbf16>
    %cst = arith.constant dense<0.000000e+00> : vector<32x32xf32>
    %2 = tpu.matmul %0, %1, %cst {dimension_numbers = #tpu.dot_dimension_numbers<[1], [0], [0], [1], [0, 0, 1, 1], [], []>} : vector<32x147xbf16>, vector<147x32xbf16>, vector<32x32xf32> -> vector<32x32xf32>
    %c0_3 = arith.constant 0 : index
    %c0_4 = arith.constant 0 : index
    %3 = vector.load %arg3[%c0_3, %c0_4] : memref<1x32xf32, #tpu.memory_space<vmem>>, vector<1x32xf32>
    %4 = vector.broadcast %3 : vector<1x32xf32> to vector<32x32xf32>
    %5 = arith.addf %2, %4 : vector<32x32xf32>
    %c0_5 = arith.constant 0 : index
    %c0_6 = arith.constant 0 : index
    %6 = vector.load %arg4[%c0_5, %c0_6] : memref<32x32xf32, #tpu.memory_space<vmem>>, vector<32x32xf32>
    tpu.vector_store %arg4[%c0_5, %c0_6], %5 {strides = array<i32>} : memref<32x32xf32, #tpu.memory_space<vmem>>, vector<32x32xf32>,
    return
  }
  func.func @transform_0(%arg0: i32) -> (i32, i32) {
    %c0_i32 = arith.constant 0 : i32
    %c0_i32_0 = arith.constant 0 : i32
    return %arg0, %c0_i32 : i32, i32
  }
  func.func @transform_1(%arg0: i32) -> (i32, i32) {
    %c0_i32 = arith.constant 0 : i32
    %c0_i32_0 = arith.constant 0 : i32
    %c0_i32_1 = arith.constant 0 : i32
    return %c0_i32, %c0_i32_0 : i32, i32
  }
  func.func @transform_2(%arg0: i32) -> (i32, i32) {
    %c0_i32 = arith.constant 0 : i32
    %c0_i32_0 = arith.constant 0 : i32
    %c0_i32_1 = arith.constant 0 : i32
    return %c0_i32, %c0_i32_0 : i32, i32
  }
  func.func @transform_3(%arg0: i32) -> (i32, i32) {
    %c0_i32 = arith.constant 0 : i32
    %c0_i32_0 = arith.constant 0 : i32
    return %arg0, %c0_i32 : i32, i32
  }
}

</mosaic_0001>

<bundles_post_ra>
// kernel: hiera_patch_embed.1
= control target key start
LH: loop header
LB: loop body
LE: loop exit
PB: predicated region body
PF: predicated region fallthrough
CT: control target
= control target key end

     0   :  { %vm125_vm0 = vcmask 1040384   ;;  %vm126_vm1 = vcmask 1041408   ;;  %v299_v2 = vmov 65535   ;;  %s389_s0 = inlined_call_operand.vmem [shape: bf16[32,147], index: 0, kind: input, shape index: {}]   ;;  %s390_s1 = inlined_call_operand.vmem [shape: bf16[147,32], index: 1, kind: input, shape index: {}]   ;;  %s391_s2 = inlined_call_operand.vmem [shape: f32[1,32], index: 2, kind: input, shape index: {}]   ;;  %s392_s3 = inlined_call_operand.hbm [shape: f32[32,32], index: 3, kind: output, shape index: {}]  }
   0x1   :  { %v258_v0 = vld [vmem:[%s390_s1 + $0x38] sm:$0xff]  ;;  %v38_v1 = vld [vmem:[%s390_s1 + $0x48] sm:$0x3]  ;;  %v127_v3 = vsel %vm125_vm0, 4294967295, %v299_v2  ;;  %v257_v4 = vld [vmem:[%s390_s1 + $0x30] sm:$0xff] }
   0x2   :  { %132 = vmatpush.bf16.msra.mxu0 %v258_v0  ;;  %260 = vmatpush.bf16.msra.mxu2 %v258_v0  ;;  %v98_v5 = vunpack.c.l.b16 %v38_v1  ;;  %v128_v6 = vsel %vm126_vm1, %v127_v3, 0  ;;  %v256_v8 = vld [vmem:[%s390_s1 + $0x28] sm:$0xff] }
   0x4   :  { %v108_v7 = vpack.c.b16 %v98_v5, %v98_v5 }
   0x6   :  { %133 = vmatpush.bf16.msra.mxu0 %v257_v4  ;;  %261 = vmatpush.bf16.msra.mxu2 %v257_v4  ;;  %v130_v9 = vand.u32 %v128_v6, %v108_v7 }
   0x7   :  { %8 = vsyncpa [#allocation3], 0  ;;  %v259_v10 = vld [vmem:[%s390_s1 + $0x40] sm:$0xff]  ;;  %v197_v12 = vld [vmem:[%s389_s0 + $0x8] sm:$0xf0]  ;;  %vm118_vm2 = vcmask 154624  }
   0x8   :  { %157 = vmatpush.bf16.msra.mxu1 %v130_v9  ;;  %v247_v11 = vld [vmem:[%s389_s0 + $0x4] sm:$0xf]  ;;  %v254_v15 = vld [vmem:[%s390_s1 + $0x18] sm:$0xff]  ;;  %v253_v16 = vld [vmem:[%s390_s1 + $0x10] sm:$0xff]  ;;  %vm170_vm3 = vcmask 261120   ;;  %s181_s24 = sshll.u32 %s392_s3, 4  ;;  %s182_s24 = int_to_ptr.hbm [resolvable:$true] %s181_s24 }
   0x9   :  { %v255_v13 = vld [vmem:[%s390_s1 + $0x20] sm:$0xff]  ;;  %v200_v14 = vor.u32 %v247_v11, %v197_v12  ;;  %v252_v17 = vld [vmem:[%s390_s1 + $0x8] sm:$0xff]  ;;  %v249_v18 = vld [vmem:[%s389_s0 + $0x14] sm:$0xf]  ;;  %s301_s25 = smov 128   ;;  %s302_s26 = smov 8  }
   0xa   :  { %134 = vmatpush.bf16.msra.mxu0 %v256_v8  ;;  %262 = vmatpush.bf16.msra.mxu2 %v256_v8  ;;  %v205_v19 = vld [vmem:[%s389_s0 + $0x18] sm:$0xf0]  ;;  %v251_v20 = vld [vmem:[%s390_s1] sm:$0xff]  ;;  %v248_v22 = vld [vmem:[%s389_s0 + $0x4] sm:$0xf0] }
   0xb   :  { %v195_v21 = vld [vmem:[%s389_s0] sm:$0xf]  ;;  %v203_v23 = vld [vmem:[%s389_s0 + $0x10] sm:$0xf]  ;;  %v250_v24 = vld [vmem:[%s389_s0 + $0x14] sm:$0xf0]  ;;  %v208_v25 = vor.u32 %v249_v18, %v205_v19 }
   0xc   :  { %158 = vmatpush.bf16.msra.mxu1 %v259_v10  ;;  %v196_v26 = vor.u32 %v248_v22, %v195_v21  ;;  %v204_v27 = vor.u32 %v250_v24, %v203_v23  ;;  %v272_v30 = vld [vmem:[%s391_s2] ss:$0 sm:$0xff]  ;;  %s300_s0 = smov [#allocation2]  }
   0xd   :  { %s179_s22 = sshll.u32 %s300_s0, 4  ;;  %s180_s22 = int_to_ptr.vmem [resolvable:$true] %s179_s22 }
   0xe   :  { %135 = vmatpush.bf16.msra.mxu0 %v255_v13  ;;  %263 = vmatpush.bf16.msra.mxu2 %v255_v13 }
   0xf   :  { %245 = vmatmul.msk.bf16.vlgmr.msra.gmra.mxu1 %vm118_vm2, %v200_v14 }
  0x12   :  { %136 = vmatpush.bf16.msra.mxu0 %v254_v15  ;;  %264 = vmatpush.bf16.msra.mxu2 %v254_v15 }
  0x16   :  { %137 = vmatpush.bf16.msra.mxu0 %v253_v16  ;;  %265 = vmatpush.bf16.msra.mxu2 %v253_v16 }
  0x1a   :  { %138 = vmatpush.bf16.msra.mxu0 %v252_v17  ;;  %266 = vmatpush.bf16.msra.mxu2 %v252_v17 }
  0x1e   :  { %139 = vmatpush.bf16.msra.mxu0 %v251_v20  ;;  %267 = vmatpush.bf16.msra.mxu2 %v251_v20 }
  0x1f   :  { %246 = vmatmul.msk.bf16.gmra.mxu1 %vm118_vm2, %v208_v25 }
  0x21   :  { %140 = vmatmul.bf16.vlgmr.msra.gmra.mxu0 %v196_v26  ;;  %145 = vmatmul.bf16.vlgmr.msra.gmra.mxu2 %v204_v27 }
  0x8c   :  { %v160_v28 = vpop.f32.mrf.mxu1 }
  0x94   :  { %v162_v29 = vpop.f32.mrf.mxu1 }
  0x9c   :  { %v165_v34 = vpop.f32.mrf.mxu1 }
  0x9e   :  { %v141_v31 = vpop.f32.mrf.mxu0 }
  0x9f   :  { %v142_v32 = vadd.f32 %v272_v30, %v141_v31 }
  0xa1   :  { %v161_v33 = vadd.f32 %v160_v28, %v142_v32 }
  0xa3   :  { %171 = vst.msk [vmem:[#allocation2] sm:$0xff] %vm170_vm3, %v161_v33 }
  0xa4   :  { %v146_v35 = vpop.f32.mrf.mxu2  ;;  %v167_v43 = vpop.f32.mrf.mxu1 }
  0xa5   :  { %v147_v36 = vadd.f32 %v272_v30, %v146_v35 }
  0xa6   :  { %v143_v37 = vpop.f32.mrf.mxu0 }
  0xa7   :  { %v166_v38 = vadd.f32 %v165_v34, %v147_v36  ;;  %v144_v39 = vadd.f32 %v272_v30, %v143_v37 }
  0xa9   :  { %173 = vst.msk [vmem:[#allocation2 + $0x10] sm:$0xff] %vm170_vm3, %v166_v38  ;;  %v163_v40 = vadd.f32 %v162_v29, %v144_v39 }
  0xab   :  { %172 = vst.msk [vmem:[#allocation2 + $0x8] sm:$0xff] %vm170_vm3, %v163_v40 }
  0xac   :  { %v148_v41 = vpop.f32.mrf.mxu2 }
  0xad   :  { %v149_v42 = vadd.f32 %v272_v30, %v148_v41 }
  0xaf   :  { %v168_v44 = vadd.f32 %v167_v43, %v149_v42 }
  0xb1   :  { %174 = vst.msk [vmem:[#allocation2 + $0x18] sm:$0xff] %vm170_vm3, %v168_v44 }
  0xb2   :  { %187 = dma.vmem_to_hbm [thread:$0]  %s180_s22, 512, %s182_s24, [#allocation3], %s301_s25, %s301_s25, %s302_s26  }
  0xb3   :  { %297 = dma.done.wait [#allocation3], 512  }
  0xb4   :  { %298 = vsyncadd [#allocation3], 4294966784 }
  0xb5   :  { %192 = vsyncpa [#allocation3], 1 }

</bundles_post_ra>
